<compile_context>
chip_gen: v7x
topology: tpu7x:2x2x1
jax: 0.10.0
libtpu: 0.0.40
codegen_flags: <defaults>
</compile_context>

<pallas_src>
import jax
import jax.numpy as jnp
from jax import lax
from jax.experimental import pallas as pl
from jax.experimental.pallas import tpu as pltpu

_INV_SQRT2 = 0.7071067811865476  # hoisted 1/sqrt(2)
_LN_EPS = 1e-12


def _head_kernel(x_ref, wt_ref, bt_ref, g_ref, be_ref, wd_ref, bd_ref,
                 out_ref, h_ref):
    """Grid = (row tiles i, vocab tiles j).  h_ref caches the transform."""
    j = pl.program_id(1)

    # --- transform (dense + GELU + LayerNorm), once per row tile ------------
    @pl.when(j == 0)
    def _():
        x = x_ref[...]
        # bf16 x bf16 MXU matmul, f32 accumulation.
        h = jnp.dot(x.astype(jnp.bfloat16), wt_ref[...],
                    preferred_element_type=jnp.float32) + bt_ref[...]
        # exact (erf-based) GELU, as in torch/BERT
        h = 0.5 * h * (1.0 + lax.erf(h * _INV_SQRT2))
        # single-pass LayerNorm statistics: var = E[h^2] - E[h]^2
        m1 = jnp.mean(h, axis=-1, keepdims=True)
        m2 = jnp.mean(h * h, axis=-1, keepdims=True)
        var = m2 - m1 * m1
        h_ref[...] = (h - m1) * lax.rsqrt(var + _LN_EPS) * g_ref[...] + be_ref[...]

    # --- decoder: Linear(H, tn) for this vocab tile -------------------------
    h = h_ref[...]
    logits = jnp.dot(h.astype(jnp.bfloat16), wd_ref[...],
                     preferred_element_type=jnp.float32) + bd_ref[...]
    out_ref[...] = logits.astype(out_ref.dtype)


def _pick_vocab_tile(V):
    for c in (4096, 2048, 1024, 512, 256, 128):
        if V % c == 0:
            return c
    return V


def bert_prediction_head(hidden_states, params, *, tm=128, tn=None):
    """hidden_states: [..., H] -> logits [..., V]."""
    w_t, b_t, gamma, beta, w_d, b_d = params
    *lead, H = hidden_states.shape
    V = w_d.shape[1]

    M = 1
    for d in lead:
        M *= d
    x2d = hidden_states.reshape(M, H)

    if tn is None:
        tn = _pick_vocab_tile(V)
    assert V % tn == 0 and (tn % 128 == 0 or tn == V)

    n_i = pl.cdiv(M, tm)
    M_pad = n_i * tm
    if M_pad != M:
        x2d = jnp.pad(x2d, ((0, M_pad - M), (0, 0)))
    n_j = V // tn

    # Explicit VMEM budget (double-buffered pipeline blocks + scratch), with
    # headroom; floored at the 32 MiB scoped default, capped under v5e/v6e
    # physical VMEM.  Tile sizes should be chosen per-generation so this stays
    # well under 64 MiB on v7x.
    out_itemsize = jnp.dtype(hidden_states.dtype).itemsize
    vmem_est = (2 * tm * H * x2d.dtype.itemsize          # x row tile
                + 2 * H * H * w_t.dtype.itemsize         # transform weight
                + 2 * 3 * H * 4                          # bias / gamma / beta
                + 2 * H * tn * w_d.dtype.itemsize        # decoder weight tile
                + 2 * tn * 4                             # decoder bias tile
                + 2 * tm * tn * out_itemsize             # output tile
                + tm * H * 4)                            # transform scratch
    vmem_limit = max(32 << 20, min(int(vmem_est * 1.5) + (4 << 20), 112 << 20))

    out = pl.pallas_call(
        _head_kernel,
        out_shape=jax.ShapeDtypeStruct((M_pad, V), hidden_states.dtype),
        grid_spec=pltpu.PrefetchScalarGridSpec(
            num_scalar_prefetch=0,
            grid=(n_i, n_j),
            in_specs=[
                pl.BlockSpec((tm, H), lambda i, j: (i, 0)),   # x rows
                pl.BlockSpec((H, H), lambda i, j: (0, 0)),    # transform W [in,out], bf16
                pl.BlockSpec((1, H), lambda i, j: (0, 0)),    # transform bias
                pl.BlockSpec((1, H), lambda i, j: (0, 0)),    # LN gamma
                pl.BlockSpec((1, H), lambda i, j: (0, 0)),    # LN beta
                pl.BlockSpec((H, tn), lambda i, j: (0, j)),   # decoder W tile, bf16
                pl.BlockSpec((1, tn), lambda i, j: (0, j)),   # decoder bias tile
            ],
            out_specs=pl.BlockSpec((tm, tn), lambda i, j: (i, j)),
            scratch_shapes=[pltpu.VMEM((tm, H), jnp.float32)],  # cached transform
        ),
        compiler_params=pltpu.CompilerParams(
            dimension_semantics=("parallel", "arbitrary"),
            vmem_limit_bytes=vmem_limit,
        ),
    )(x2d, w_t, b_t, gamma, beta, w_d, b_d)

    if M_pad != M:
        out = out[:M]
    return out.reshape(*lead, V)


def bert_prediction_head_forward(batched_inputs, params, *, tm=128, tn=None):
    """Module forward: handles U_HIDDEN_STATES / G_HIDDEN_STATES with ONE
    pallas_call over the concatenated rows (amortizes streamed weights)."""
    entries = []
    for in_key, out_key in (("U_HIDDEN_STATES", "U_LOGITS"),
                            ("G_HIDDEN_STATES", "G_LOGITS")):
        if in_key in batched_inputs:
            hs = batched_inputs[in_key]
            if isinstance(hs, list):
                hs = hs[-1]
            entries.append((out_key, hs))
    if not entries:
        return {}

    H = entries[0][1].shape[-1]
    flats = [hs.reshape(-1, H) for _, hs in entries]
    x_all = jnp.concatenate(flats, axis=0)
    logits_all = bert_prediction_head(x_all, params, tm=tm, tn=tn)
    V = logits_all.shape[-1]

    ret = {}
    off = 0
    for (out_key, hs), flat in zip(entries, flats):
        n = flat.shape[0]
        ret[out_key] = logits_all[off:off + n].reshape(*hs.shape[:-1], V)
        off += n
    return ret


def _reference(hidden_states, params):
    """Pure-JAX reference with the same bf16-weight / f32-accum numerics."""
    w_t, b_t, gamma, beta, w_d, b_d = params
    h = jnp.dot(hidden_states.astype(jnp.bfloat16), w_t,
                preferred_element_type=jnp.float32) + b_t
    h = 0.5 * h * (1.0 + lax.erf(h * _INV_SQRT2))
    mean = jnp.mean(h, axis=-1, keepdims=True)
    var = jnp.mean((h - mean) ** 2, axis=-1, keepdims=True)
    h = (h - mean) * lax.rsqrt(var + _LN_EPS) * gamma + beta
    return jnp.dot(h.astype(jnp.bfloat16), w_d,
                   preferred_element_type=jnp.float32) + b_d


def make_params(key, hidden_size, vocab_size):
    k1, k2, k3 = jax.random.split(key, 3)
    scale = 0.02
    # Weights stored pre-transposed as [in, out] and in bf16 (streamed dtype);
    # biases / LayerNorm params stay f32.
    w_t = (scale * jax.random.normal(k1, (hidden_size, hidden_size),
                                     jnp.float32)).astype(jnp.bfloat16)
    b_t = 0.01 * jax.random.normal(k2, (1, hidden_size), jnp.float32)
    gamma = jnp.ones((1, hidden_size), jnp.float32)
    beta = jnp.zeros((1, hidden_size), jnp.float32)
    w_d = (scale * jax.random.normal(k3, (hidden_size, vocab_size),
                                     jnp.float32)).astype(jnp.bfloat16)
    b_d = jnp.zeros((1, vocab_size), jnp.float32)  # module inits decoder bias to zeros
    return (w_t, b_t, gamma, beta, w_d, b_d)


if __name__ == "__main__":
    B, S, H, V = 2, 8, 32, 512
    key = jax.random.PRNGKey(0)
    kp, ku, kg = jax.random.split(key, 3)
    params = make_params(kp, H, V)

    u_hidden = jax.random.normal(ku, (B, S, H), jnp.float32)
    g_hidden = jax.random.normal(kg, (B, S, H), jnp.float32)
    batched_inputs = {"U_HIDDEN_STATES": u_hidden, "G_HIDDEN_STATES": g_hidden}

    # tn=256 -> two vocab tiles at the demo shape, exercising the cached-transform path.
    ret = bert_prediction_head_forward(batched_inputs, params, tm=128, tn=256)
    jax.block_until_ready(ret)

    # sanity check against the pure-JAX reference
    for name, x in (("U_LOGITS", u_hidden), ("G_LOGITS", g_hidden)):
        ref = _reference(x, params)
        assert ret[name].shape == (B, S, V), name
        assert jnp.allclose(ret[name], ref, atol=5e-3, rtol=5e-3), name

    print("KERNEL_OK")
</pallas_src>

<mosaic_0001>
module attributes {stable_mosaic.version = 11 : i64} {
  func.func @_head_kernel(%arg0: i32, %arg1: i32, %arg2: memref<128x32xf32, #tpu.memory_space<vmem>>, %arg3: memref<32x32xbf16, #tpu.memory_space<vmem>>, %arg4: memref<1x32xf32, #tpu.memory_space<vmem>>, %arg5: memref<1x32xf32, #tpu.memory_space<vmem>>, %arg6: memref<1x32xf32, #tpu.memory_space<vmem>>, %arg7: memref<32x256xbf16, #tpu.memory_space<vmem>>, %arg8: memref<1x256xf32, #tpu.memory_space<vmem>>, %arg9: memref<128x256xf32, #tpu.memory_space<vmem>>, %arg10: memref<128x32xf32, #tpu.memory_space<vmem>>) attributes {dimension_semantics = [#tpu.dimension_semantics<parallel>, #tpu.dimension_semantics<arbitrary>], iteration_bounds = array<i64: 1, 2>, scalar_prefetch = 0 : i64, scratch_operands = 1 : i64, tpu.core_type = #tpu.core_type<tc>, window_params = [{transform_indices = @transform_0, window_bounds = array<i64: 128, 32>}, {pipeline_mode = #tpu.pipeline_mode<synchronous>, transform_indices = @transform_1, window_bounds = array<i64: 32, 32>}, {pipeline_mode = #tpu.pipeline_mode<synchronous>, transform_indices = @transform_2, window_bounds = array<i64: 1, 32>}, {pipeline_mode = #tpu.pipeline_mode<synchronous>, transform_indices = @transform_3, window_bounds = array<i64: 1, 32>}, {pipeline_mode = #tpu.pipeline_mode<synchronous>, transform_indices = @transform_4, window_bounds = array<i64: 1, 32>}, {transform_indices = @transform_5, window_bounds = array<i64: 32, 256>}, {transform_indices = @transform_6, window_bounds = array<i64: 1, 256>}, {transform_indices = @transform_7, window_bounds = array<i64: 128, 256>}]} {
    %c0_i32 = arith.constant 0 : i32
    %0 = arith.cmpi eq, %arg1, %c0_i32 : i32
    %1 = arith.extui %0 : i1 to i32
    %c0_i32_0 = arith.constant 0 : i32
    %2 = arith.cmpi ne, %1, %c0_i32_0 : i32
    scf.if %2 {
      %c0_8 = arith.constant 0 : index
      %c0_9 = arith.constant 0 : index
      %11 = vector.load %arg2[%c0_8, %c0_9] : memref<128x32xf32, #tpu.memory_space<vmem>>, vector<128x32xf32>
      %12 = arith.truncf %11 : vector<128x32xf32> to vector<128x32xbf16>
      %c0_10 = arith.constant 0 : index
      %c0_11 = arith.constant 0 : index
      %13 = vector.load %arg3[%c0_10, %c0_11] : memref<32x32xbf16, #tpu.memory_space<vmem>>, vector<32x32xbf16>
      %cst_12 = arith.constant dense<0.000000e+00> : vector<128x32xf32>
      %14 = tpu.matmul %12, %13, %cst_12 {dimension_numbers = #tpu.dot_dimension_numbers<[1], [0], [0], [1], [0, 0, 1, 1], [], []>} : vector<128x32xbf16>, vector<32x32xbf16>, vector<128x32xf32> -> vector<128x32xf32>
      %c0_13 = arith.constant 0 : index
      %c0_14 = arith.constant 0 : index
      %15 = vector.load %arg4[%c0_13, %c0_14] : memref<1x32xf32, #tpu.memory_space<vmem>>, vector<1x32xf32>
      %16 = vector.broadcast %15 : vector<1x32xf32> to vector<128x32xf32>
      %17 = arith.addf %14, %16 : vector<128x32xf32>
      %cst_15 = arith.constant 5.000000e-01 : f32
      %18 = vector.broadcast %cst_15 : f32 to vector<128x32xf32>
      %19 = arith.mulf %18, %17 : vector<128x32xf32>
      %cst_16 = arith.constant 0.707106769 : f32
      %20 = vector.broadcast %cst_16 : f32 to vector<128x32xf32>
      %21 = arith.mulf %17, %20 : vector<128x32xf32>
      %22 = math.erf %21 : vector<128x32xf32>
      %cst_17 = arith.constant 1.000000e+00 : f32
      %23 = vector.broadcast %cst_17 : f32 to vector<128x32xf32>
      %24 = arith.addf %23, %22 : vector<128x32xf32>
      %25 = arith.mulf %19, %24 : vector<128x32xf32>
      %cst_18 = arith.constant dense<0.000000e+00> : vector<128xf32>
      %26 = vector.multi_reduction <add>, %25, %cst_18 [1] : vector<128x32xf32> to vector<128xf32>
      %27 = vector.shape_cast %26 : vector<128xf32> to vector<128x1xf32>
      %cst_19 = arith.constant 3.200000e+01 : f32
      %28 = vector.broadcast %cst_19 : f32 to vector<128x1xf32>
      %29 = arith.divf %27, %28 : vector<128x1xf32>
      %30 = arith.mulf %25, %25 : vector<128x32xf32>
      %cst_20 = arith.constant dense<0.000000e+00> : vector<128xf32>
      %31 = vector.multi_reduction <add>, %30, %cst_20 [1] : vector<128x32xf32> to vector<128xf32>
      %32 = vector.shape_cast %31 : vector<128xf32> to vector<128x1xf32>
      %cst_21 = arith.constant 3.200000e+01 : f32
      %33 = vector.broadcast %cst_21 : f32 to vector<128x1xf32>
      %34 = arith.divf %32, %33 : vector<128x1xf32>
      %35 = arith.mulf %29, %29 : vector<128x1xf32>
      %36 = arith.subf %34, %35 : vector<128x1xf32>
      %37 = vector.broadcast %29 : vector<128x1xf32> to vector<128x32xf32>
      %38 = arith.subf %25, %37 : vector<128x32xf32>
      %cst_22 = arith.constant 9.99999996E-13 : f32
      %39 = vector.broadcast %cst_22 : f32 to vector<128x1xf32>
      %40 = arith.addf %36, %39 : vector<128x1xf32>
      %41 = math.rsqrt %40 : vector<128x1xf32>
      %42 = vector.broadcast %41 : vector<128x1xf32> to vector<128x32xf32>
      %43 = arith.mulf %38, %42 : vector<128x32xf32>
      %c0_23 = arith.constant 0 : index
      %c0_24 = arith.constant 0 : index
      %44 = vector.load %arg5[%c0_23, %c0_24] : memref<1x32xf32, #tpu.memory_space<vmem>>, vector<1x32xf32>
      %45 = vector.broadcast %44 : vector<1x32xf32> to vector<128x32xf32>
      %46 = arith.mulf %43, %45 : vector<128x32xf32>
      %c0_25 = arith.constant 0 : index
      %c0_26 = arith.constant 0 : index
      %47 = vector.load %arg6[%c0_25, %c0_26] : memref<1x32xf32, #tpu.memory_space<vmem>>, vector<1x32xf32>
      %48 = vector.broadcast %47 : vector<1x32xf32> to vector<128x32xf32>
      %49 = arith.addf %46, %48 : vector<128x32xf32>
      %c0_27 = arith.constant 0 : index
      %c0_28 = arith.constant 0 : index
      %50 = vector.load %arg10[%c0_27, %c0_28] : memref<128x32xf32, #tpu.memory_space<vmem>>, vector<128x32xf32>
      tpu.vector_store %arg10[%c0_27, %c0_28], %49 {strides = array<i32>} : memref<128x32xf32, #tpu.memory_space<vmem>>, vector<128x32xf32>,
    } else {
    }
    %c0 = arith.constant 0 : index
    %c0_1 = arith.constant 0 : index
    %3 = vector.load %arg10[%c0, %c0_1] : memref<128x32xf32, #tpu.memory_space<vmem>>, vector<128x32xf32>
    %4 = arith.truncf %3 : vector<128x32xf32> to vector<128x32xbf16>
    %c0_2 = arith.constant 0 : index
    %c0_3 = arith.constant 0 : index
    %5 = vector.load %arg7[%c0_2, %c0_3] : memref<32x256xbf16, #tpu.memory_space<vmem>>, vector<32x256xbf16>
    %cst = arith.constant dense<0.000000e+00> : vector<128x256xf32>
    %6 = tpu.matmul %4, %5, %cst {dimension_numbers = #tpu.dot_dimension_numbers<[1], [0], [0], [1], [0, 0, 1, 1], [], []>} : vector<128x32xbf16>, vector<32x256xbf16>, vector<128x256xf32> -> vector<128x256xf32>
    %c0_4 = arith.constant 0 : index
    %c0_5 = arith.constant 0 : index
    %7 = vector.load %arg8[%c0_4, %c0_5] : memref<1x256xf32, #tpu.memory_space<vmem>>, vector<1x256xf32>
    %8 = vector.broadcast %7 : vector<1x256xf32> to vector<128x256xf32>
    %9 = arith.addf %6, %8 : vector<128x256xf32>
    %c0_6 = arith.constant 0 : index
    %c0_7 = arith.constant 0 : index
    %10 = vector.load %arg9[%c0_6, %c0_7] : memref<128x256xf32, #tpu.memory_space<vmem>>, vector<128x256xf32>
    tpu.vector_store %arg9[%c0_6, %c0_7], %9 {strides = array<i32>} : memref<128x256xf32, #tpu.memory_space<vmem>>, vector<128x256xf32>,
    return
  }
  func.func @transform_0(%arg0: i32, %arg1: i32) -> (i32, i32) {
    %c0_i32 = arith.constant 0 : i32
    %c0_i32_0 = arith.constant 0 : i32
    return %arg0, %c0_i32 : i32, i32
  }
  func.func @transform_1(%arg0: i32, %arg1: i32) -> (i32, i32) {
    %c0_i32 = arith.constant 0 : i32
    %c0_i32_0 = arith.constant 0 : i32
    %c0_i32_1 = arith.constant 0 : i32
    return %c0_i32, %c0_i32_0 : i32, i32
  }
  func.func @transform_2(%arg0: i32, %arg1: i32) -> (i32, i32) {
    %c0_i32 = arith.constant 0 : i32
    %c0_i32_0 = arith.constant 0 : i32
    %c0_i32_1 = arith.constant 0 : i32
    return %c0_i32, %c0_i32_0 : i32, i32
  }
  func.func @transform_3(%arg0: i32, %arg1: i32) -> (i32, i32) {
    %c0_i32 = arith.constant 0 : i32
    %c0_i32_0 = arith.constant 0 : i32
    %c0_i32_1 = arith.constant 0 : i32
    return %c0_i32, %c0_i32_0 : i32, i32
  }
  func.func @transform_4(%arg0: i32, %arg1: i32) -> (i32, i32) {
    %c0_i32 = arith.constant 0 : i32
    %c0_i32_0 = arith.constant 0 : i32
    %c0_i32_1 = arith.constant 0 : i32
    return %c0_i32, %c0_i32_0 : i32, i32
  }
  func.func @transform_5(%arg0: i32, %arg1: i32) -> (i32, i32) {
    %c0_i32 = arith.constant 0 : i32
    %c0_i32_0 = arith.constant 0 : i32
    return %c0_i32, %arg1 : i32, i32
  }
  func.func @transform_6(%arg0: i32, %arg1: i32) -> (i32, i32) {
    %c0_i32 = arith.constant 0 : i32
    %c0_i32_0 = arith.constant 0 : i32
    return %c0_i32, %arg1 : i32, i32
  }
  func.func @transform_7(%arg0: i32, %arg1: i32) -> (i32, i32) {
    %c0_i32 = arith.constant 0 : i32
    return %arg0, %arg1 : i32, i32
  }
}

</mosaic_0001>

<bundles_post_ra>
// kernel: tpu_custom_call.1
= control target key start
LH: loop header
LB: loop body
LE: loop exit
PB: predicated region body
PF: predicated region fallthrough
CT: control target
= control target key end

     0   :  { %s2222_s0 = inlined_call_operand.vmem [shape: f32[128,32], index: 0, kind: input, shape index: {}]   ;;  %s2223_s1 = inlined_call_operand.vmem [shape: bf16[32,32], index: 1, kind: input, shape index: {}]   ;;  %s2224_s2 = inlined_call_operand.vmem [shape: f32[1,32], index: 2, kind: input, shape index: {}]   ;;  %s2225_s3 = inlined_call_operand.vmem [shape: f32[1,32], index: 3, kind: input, shape index: {}]   ;;  %s2226_s4 = inlined_call_operand.vmem [shape: f32[1,32], index: 4, kind: input, shape index: {}]   ;;  %s2227_s5 = inlined_call_operand.vmem [shape: bf16[32,512], index: 5, kind: input, shape index: {}]   ;;  %s2228_s6 = inlined_call_operand.vmem [shape: f32[1,512], index: 6, kind: input, shape index: {}]   ;;  %s2229_s7 = inlined_call_operand.hbm [shape: f32[128,512], index: 7, kind: output, shape index: {}]  }
   0x1   :  { %2230 = sst [smem:[#allocation7_spill]] %s2227_s5 }
   0x2   :  { %12 = vsyncpa [#allocation5], 0 }
   0x3   :  { %14 = vsyncpa [#allocation5 + $0x1], 0  ;;  %s1628_s24 = smov 0   ;;  %s1630_s25 = smov 0  }
   0x4   :  { %s1632_s26 = smov 0   ;;  %s1634_s27 = smov 0  }
   0x5   :  { %s1636_s28 = smov 0   ;;  %s1638_s29 = smov 0  }
   0x6 LB: > { %s1289_s30 = sadd.s32 4294967295, %s1581_s29   ;;  %s1290_s8 = sadd.s32 4294967294, %s1581_s29   ;;  %s1581_s29 = sphi %s1638_s29, %s20_s29   ;;  %s1577_s28 = sphi %s1636_s28, %s2239_s28   ;;  %s1573_s27 = sphi %s1634_s27, %s2238_s27   ;;  %s1569_s26 = sphi %s1632_s26, %s2237_s26   ;;  %s1565_s25 = sphi %s1630_s25, %s2236_s25   ;;  %s1561_s24 = sphi %s1628_s24, %s2235_s24  }
   0x7   : > { %s29_s9 = sadd.s32 1, %s1577_s28  ;;  %s149_s10 = sadd.s32 1, %s1569_s26 }
   0x8   : > { %p30_p0 = scmp.ge.s32.totalorder %s29_s9, 2  ;;  %p156_p1 = scmp.ne.s32.totalorder %s1569_s26, %s1565_s25 }
   0x9   : > { %p157_p2 = scmp.eq.s32.totalorder %s1581_s29, 0  ;;  %p214_p3 = scmp.eq.s32.totalorder %s1289_s30, 1 }
   0xa   : > { %s2241_s9 = smov (%p30_p0, %s29_s9), 0  ;;  %p219_p6 = scmp.ne.s32.totalorder %s1565_s25, %s1561_s24 }
   0xb   : > { %p158_p4 = por %p157_p2, %p156_p1  ;;  %p1667_p5 = por %p214_p3, %p156_p1 }
   0xc   : > { %s146_s12 = ssub.s32 %s1577_s28, %s2241_s9  ;;  %p220_p8 = scmp.eq.s32.totalorder %s1290_s8, 1 }
   0xd   : > { %p147_p7 = scmp.eq.s32.totalorder %s146_s12, 0  ;;  %p1293_p10 = scmp.ge.s32.totalorder %s1581_s29, 2 }
   0xe   : > { %p1678_p9 = por %p220_p8, %p219_p6 }
   0xf   : > { %s1676_s13 = scalar_select %p147_p7, %s1569_s26, %s149_s10  }
  0x10   : > { %257 = sbr.rel (%p1293_p10) target bundleno = 35 (0x23), region = 36 }
  0x17   : > { %260 = sbr.rel (!%p158_p4) target bundleno = 35 (0x23), region = 40  ;;  %s262_s15 = sand.u32 (%p158_p4), 1, %s1569_s26  }
  0x18   : > { %s1332_s16 = sshll.u32 (%p158_p4), %s1577_s28, 3  ;;  %s1294_s17 = sshll.u32 (%p158_p4), %s262_s15, 5 }
  0x19   : > { %s2233_s5 = sld [smem:[#allocation7_spill]] (%p158_p4)  ;;  %s264_s21 = scalar_lea.vmem (%p158_p4), [#allocation3], %s1294_s17 }
  0x1f   : > { %s267_s20 = scalar_lea.vmem %s2233_s5, %s1332_s16 }
  0x20   : > { %v301_v0 = vld [vmem:[%s267_s20] sm:$0xff]  ;;  %v303_v1 = vld [vmem:[%s267_s20 + $0x10] sm:$0xff] }
  0x21   : > { %v305_v2 = vld [vmem:[%s267_s20 + $0x20] sm:$0xff]  ;;  %302 = vst [vmem:[%s264_s21] sm:$0xff] %v301_v0  ;;  %304 = vst [vmem:[%s264_s21 + $0x8] sm:$0xff] %v303_v1  ;;  %v307_v3 = vld [vmem:[%s267_s20 + $0x30] sm:$0xff] }
  0x22   : > { %306 = vst [vmem:[%s264_s21 + $0x10] sm:$0xff] %v305_v2  ;;  %308 = vst [vmem:[%s264_s21 + $0x18] sm:$0xff] %v307_v3 }
  0x23 PF: > { %p1297_p11 = scmp.ge.s32.totalorder %s1581_s29, 1  ;;  %p321_p12 = scmp.lt.s32.totalorder %s1581_s29, 3 }
  0x25   : > { %p322_p13 = pnand %p1297_p11, %p321_p12 }
  0x26   : > { %s1693_s22 = sand.u32 (!%p322_p13), 1, %s1565_s25   ;;  %s1300_s23 = sshll.u32 (!%p322_p13), %s1573_s27, 1 }
  0x27   : > { %325 = sbr.rel (%p322_p13) target bundleno = 783 (0x30f), region = 82  ;;  %s1298_s30 = sshll.u32 (!%p322_p13), %s1693_s22, 5 }
  0x28   : > { %s1299_s8 = sshll.u32 (!%p322_p13), %s1693_s22, 8  ;;  %p376_p0 = scmp.lt.s32.totalorder (!%p322_p13), %s1300_s23, 3 }
  0x29   : > { %s1704_s16 = scalar_lea.vmem (!%p322_p13), [#allocation3], %s1298_s30  ;;  %s1706_s17 = scalar_lea.vmem (!%p322_p13), [#allocation4], %s1299_s8 }
  0x2a   : > { %p1301_p1 = scmp.ne.s32.totalorder (!%p322_p13), %s1573_s27, 0 }
  0x2e   : > { %s2243_s23 = smov (!%p376_p0, %s1300_s23), 3  ;;  %386 = sbr.rel (%p1301_p1) target bundleno = 516 (0x204), region = 90 }
  0x2f   : > { %v1431_v4 = vld [vmem:[%s2223_s1] sm:$0xff] (!%p1301_p1)   ;;  %v1432_v5 = vld [vmem:[%s2223_s1 + $0x8] sm:$0xff] (!%p1301_p1)   ;;  %vm434_vm0 = vcmask (!%p1301_p1), 261120   ;;  %v389_v11 = vld [vmem:[%s2222_s0 + $0x10] sm:$0xff] (!%p1301_p1) }
  0x30   : > { %1344 = vmatprep.subr.bf16.mxu0 (!%p1301_p1), %v1431_v4  ;;  %1364 = vmatprep.subr.bf16.mxu1 (!%p1301_p1), %v1431_v4  ;;  %v387_v6 = vld [vmem:[%s2222_s0] sm:$0xff] (!%p1301_p1)  ;;  %v388_v7 = vld [vmem:[%s2222_s0 + $0x8] sm:$0xff] (!%p1301_p1)  ;;  %v390_v12 = vld [vmem:[%s2222_s0 + $0x18] sm:$0xff] (!%p1301_p1) }
  0x31   : > { %v395_v8 = vld [vmem:[%s2222_s0 + $0x40] sm:$0xff] (!%p1301_p1)  ;;  %1345 = vmatpush3.bf16.msra.mxu0 (!%p1301_p1), %v1431_v4  ;;  %1366 = vmatpush3.bf16.msra.mxu1 (!%p1301_p1), %v1431_v4  ;;  %v403_v9 = vpack.c.bf16 (!%p1301_p1), %v388_v7, %v387_v6  ;;  %v396_v10 = vld [vmem:[%s2222_s0 + $0x48] sm:$0xff] (!%p1301_p1)  ;;  %v397_v14 = vld [vmem:[%s2222_s0 + $0x50] sm:$0xff] (!%p1301_p1)  ;;  %v404_v18 = vpack.c.bf16 (!%p1301_p1), %v390_v12, %v389_v11 }
  0x32   : > { %1346 = vmatprep.subr.bf16.mxu0 (!%p1301_p1), %v1432_v5  ;;  %1365 = vmatprep.subr.bf16.mxu1 (!%p1301_p1), %v1432_v5  ;;  %v407_v13 = vpack.c.bf16 (!%p1301_p1), %v396_v10, %v395_v8  ;;  %v398_v15 = vld [vmem:[%s2222_s0 + $0x58] sm:$0xff] (!%p1301_p1)  ;;  %v391_v16 = vld [vmem:[%s2222_s0 + $0x20] sm:$0xff] (!%p1301_p1)  ;;  %v392_v17 = vld [vmem:[%s2222_s0 + $0x28] sm:$0xff] (!%p1301_p1) }
  0x33   : > { %1348 = vmatprep.mubr.msk.bf16.mxu0 (!%p1301_p1), %vm434_vm0, %v403_v9  ;;  %v408_v19 = vpack.c.bf16 (!%p1301_p1), %v398_v15, %v397_v14  ;;  %v399_v20 = vld [vmem:[%s2222_s0 + $0x60] sm:$0xff] (!%p1301_p1)  ;;  %v400_v21 = vld [vmem:[%s2222_s0 + $0x68] sm:$0xff] (!%p1301_p1)  ;;  %v405_v22 = vpack.c.bf16 (!%p1301_p1), %v392_v17, %v391_v16  ;;  %v393_v24 = vld [vmem:[%s2222_s0 + $0x30] sm:$0xff] (!%p1301_p1) }
  0x34   : > { %1356 = vmatprep.mubr.msk.bf16.mxu1 (!%p1301_p1), %vm434_vm0, %v407_v13  ;;  %v409_v23 = vpack.c.bf16 (!%p1301_p1), %v400_v21, %v399_v20  ;;  %v394_v25 = vld [vmem:[%s2222_s0 + $0x38] sm:$0xff] (!%p1301_p1)  ;;  %v401_v26 = vld [vmem:[%s2222_s0 + $0x70] sm:$0xff] (!%p1301_p1)  ;;  %v1774_v30 = vld [vmem:[%s2224_s2] ss:$0 sm:$0xff] (!%p1301_p1) }
  0x35   : > { %1347 = vmatpush3.bf16.msra.mxu0 %v1432_v5  ;;  %1367 = vmatpush3.bf16.msra.mxu1 %v1432_v5  ;;  %v402_v27 = vld [vmem:[%s2222_s0 + $0x78] sm:$0xff]  ;;  %v406_v28 = vpack.c.bf16 %v394_v25, %v393_v24 }
  0x36   : > { %v410_v29 = vpack.c.bf16 %v402_v27, %v401_v26 }
  0x38   : > { %1349 = vmatmul.mubr.msk.bf16.vlgmr.msra.gmra.mrb[0].mxu0 %vm434_vm0, %v404_v18  ;;  %1357 = vmatmul.mubr.msk.bf16.vlgmr.msra.gmra.mrb[0].mxu1 %vm434_vm0, %v408_v19 }
  0x39   : > { %1352 = vmatprep.mubr.msk.bf16.mxu0 %vm434_vm0, %v405_v22  ;;  %1360 = vmatprep.mubr.msk.bf16.mxu1 %vm434_vm0, %v409_v23 }
  0x40   : > { %1353 = vmatmul.mubr.msk.bf16.gmra.mrb[4].mxu0 %vm434_vm0, %v406_v28  ;;  %1361 = vmatmul.mubr.msk.bf16.gmra.mrb[4].mxu1 %vm434_vm0, %v410_v29 }
 0x10b   : > { %v1350_v31 = vpop.f32.mrb[0].mxu0  ;;  %v1358_v32 = vpop.f32.mrb[0].mxu1 }
 0x10c   : > { %v502_v33 = vadd.f32 %v1350_v31, %v1774_v30  ;;  %v534_v34 = vadd.f32 %v1358_v32, %v1774_v30  ;;  %v493_v35 = vpop.f32.mrb[1].mxu0  ;;  %v525_v36 = vpop.f32.mrb[1].mxu1 }
 0x10d   : > { %v494_v37 = vadd.f32 %v1774_v30, %v493_v35  ;;  %v526_v38 = vadd.f32 %v1774_v30, %v525_v36  ;;  %v1351_v39 = vpop.f32.mrb[2].mxu0  ;;  %v1359_v40 = vpop.f32.mrb[2].mxu1 }
 0x10e   : > { %v574_v41 = vmul.f32 0.70710677, %v502_v33  ;;  %v582_v42 = vmul.f32 0.70710677, %v534_v34  ;;  %v505_v45 = vadd.f32 %v1351_v39, %v1774_v30  ;;  %v537_v46 = vadd.f32 %v1359_v40, %v1774_v30  ;;  %v496_v47 = vpop.f32.mrb[3].mxu0  ;;  %v528_v48 = vpop.f32.mrb[3].mxu1 }
 0x10f   : > { %v572_v43 = vmul.f32 0.70710677, %v494_v37  ;;  %v580_v44 = vmul.f32 0.70710677, %v526_v38  ;;  %v529_v49 = vadd.f32 %v1774_v30, %v528_v48  ;;  %v1786_v60 = vadd.f32 %v1774_v30, %v496_v47 }
 0x110   : > { %1433 = verf.f32 %v574_v41  ;;  %v575_v50 = vmul.f32 0.70710677, %v505_v45  ;;  %v583_v51 = vmul.f32 0.70710677, %v537_v46  ;;  %v566_v3 = vmul.f32 0.5, %v534_v34 }
 0x111   : > { %1435 = verf.f32 %v582_v42  ;;  %v581_v53 = vmul.f32 0.70710677, %v529_v49  ;;  %v573_v1 = vmul.f32 0.70710677, %v1786_v60  ;;  %v558_v6 = vmul.f32 0.5, %v502_v33 }
 0x112   : > { %1437 = verf.f32 %v572_v43  ;;  %v556_v9 = vmul.f32 0.5, %v494_v37  ;;  %v559_v12 = vmul.f32 0.5, %v505_v45  ;;  %v564_v22 = vmul.f32 0.5, %v526_v38 }
 0x113   : > { %1439 = verf.f32 %v580_v44  ;;  %v1354_v52 = vpop.f32.mrb[4].mxu0  ;;  %v1362_v55 = vpop.f32.mrb[4].mxu1  ;;  %v567_v24 = vmul.f32 0.5, %v537_v46  ;;  %v565_v33 = vmul.f32 0.5, %v529_v49 }
 0x114   : > { %1441 = verf.f32 %v575_v50  ;;  %v509_v54 = vpop.f32.mrb[5].mxu0  ;;  %v1783_v57 = vpop.f32.mrb[5].mxu1  ;;  %v518_v23 = vadd.f32 %v1354_v52, %v1774_v30  ;;  %v550_v35 = vadd.f32 %v1362_v55, %v1774_v30 }
 0x115   : > { %1443 = verf.f32 %v583_v51  ;;  %v1355_v56 = vpop.f32.mrb[6].mxu0  ;;  %v1363_v59 = vpop.f32.mrb[6].mxu1  ;;  %v510_v42 = vadd.f32 %v1774_v30, %v509_v54  ;;  %v557_v51 = vmul.f32 0.5, %v1786_v60  ;;  %v542_v54 = vadd.f32 %v1774_v30, %v1783_v57 }
 0x116   : > { %v512_v58 = vpop.f32.mrb[7].mxu0  ;;  %v1788_v61 = vpop.f32.mrb[7].mxu1  ;;  %1445 = verf.f32 %v581_v53  ;;  %v1805_v25 = vadd.f32 %v1355_v56, %v1774_v30  ;;  %v578_v32 = vmul.f32 0.70710677, %v518_v23  ;;  %v1818_v36 = vadd.f32 %v1363_v59, %v1774_v30 }
 0x117   : > { %1447 = verf.f32 %v573_v1  ;;  %v1830_v43 = vadd.f32 %v1774_v30, %v512_v58  ;;  %v586_v44 = vmul.f32 0.70710677, %v550_v35  ;;  %v576_v52 = vmul.f32 0.70710677, %v510_v42 }
 0x118   : > { %v579_v34 = vmul.f32 0.70710677, %v1805_v25  ;;  %1449 = verf.f32 %v578_v32  ;;  %v587_v46 = vmul.f32 0.70710677, %v1818_v36  ;;  %v545_v56 = vadd.f32 %v1774_v30, %v1788_v61 }
 0x119   : > { %v577_v53 = vmul.f32 0.70710677, %v1830_v43 }
 0x11a   : > { %v1434_v62 = vpop.eup %1433  ;;  %1451 = verf.f32 %v579_v34  ;;  %v585_v57 = vmul.f32 0.70710677, %v545_v56 }
 0x11b   : > { %v1436_v63 = vpop.eup %1435  ;;  %v606_v0 = vadd.f32 1.0, %v1434_v62  ;;  %1453 = verf.f32 %v586_v44  ;;  %v584_v62 = vmul.f32 0.70710677, %v542_v54 }
 0x11c   : > { %v1438_v2 = vpop.eup %1437  ;;  %v614_v4 = vadd.f32 1.0, %v1436_v63  ;;  %1455 = verf.f32 %v587_v46 }
 0x11d   : > { %v1440_v5 = vpop.eup %1439  ;;  %v604_v7 = vadd.f32 1.0, %v1438_v2  ;;  %v1793_v14 = vmul.f32 %v606_v0, %v558_v6  ;;  %1457 = verf.f32 %v576_v52 }
 0x11e   : > { %v1442_v8 = vpop.eup %1441  ;;  %v1791_v10 = vmul.f32 %v614_v4, %v566_v3  ;;  %v612_v16 = vadd.f32 1.0, %v1440_v5  ;;  %1459 = verf.f32 %v577_v53  ;;  %v562_v3 = vmul.f32 0.5, %v518_v23 }
 0x11f   : > { %v1444_v11 = vpop.eup %1443  ;;  %v607_v13 = vadd.f32 1.0, %v1442_v8  ;;  %v1795_v15 = vmul.f32 %v604_v7, %v556_v9  ;;  %v642_v20 = vsel %vm434_vm0, %v1793_v14, 0.0  ;;  %v703_v38 = vmul.f32 %v1793_v14, %v1793_v14 }
 0x120   : > { %v666_v17 = vsel %vm434_vm0, %v1791_v10, 0.0  ;;  %v615_v19 = vadd.f32 1.0, %v1444_v11  ;;  %v1446_v21 = vpop.eup %1445  ;;  %643 = vadd.xlane.f32.xlu1 %v642_v20  ;;  %v1807_v26 = vmul.f32 %v612_v16, %v564_v22  ;;  %v711_v48 = vmul.f32 %v1791_v10, %v1791_v10 }
 0x121   : > { %v1799_v18 = vmul.f32 %v607_v13, %v559_v12  ;;  %667 = vadd.xlane.f32.xlu0 %v666_v17  ;;  %v636_v27 = vsel %vm434_vm0, %v1795_v15, 0.0  ;;  %v613_v29 = vadd.f32 1.0, %v1446_v21  ;;  %v1448_v39 = vpop.eup %1447  ;;  %v723_v47 = vsel %vm434_vm0, %v703_v38, 0.0 }
 0x122   : > { %v1811_v28 = vmul.f32 %v615_v19, %v567_v24  ;;  %v660_v37 = vsel %vm434_vm0, %v1807_v26, 0.0  ;;  %v605_v45 = vadd.f32 1.0, %v1448_v39  ;;  %v747_v58 = vsel %vm434_vm0, %v711_v48, 0.0  ;;  %v1450_v63 = vpop.eup %1449 }
 0x123   : > { %v645_v31 = vsel %vm434_vm0, %v1799_v18, 0.0  ;;  %v1824_v40 = vmul.f32 %v613_v29, %v565_v33  ;;  %v704_v50 = vmul.f32 %v1799_v18, %v1799_v18  ;;  %v701_v30 = vmul.f32 %v1795_v15, %v1795_v15 }
 0x124   : > { %646 = vadd.xlane.f32.xlu1 %v645_v31  ;;  %v669_v41 = vsel %vm434_vm0, %v1811_v28, 0.0  ;;  %v1844_v55 = vmul.f32 %v605_v45, %v557_v51  ;;  %v712_v60 = vmul.f32 %v1811_v28, %v1811_v28  ;;  %v1452_v61 = vpop.eup %1451  ;;  %1461 = verf.f32 %v584_v62 }
 0x125   : > { %637 = vadd.xlane.f32.xlu0 %v636_v27  ;;  %v663_v49 = vsel %vm434_vm0, %v1824_v40, 0.0  ;;  %v726_v59 = vsel %vm434_vm0, %v704_v50, 0.0  ;;  %v610_v4 = vadd.f32 1.0, %v1450_v63  ;;  %1463 = verf.f32 %v585_v57  ;;  %v1454_v7 = vpop.eup %1453 }
 0x126   : > { %v639_v0 = vsel %vm434_vm0, %v1844_v55, 0.0  ;;  %v750_v1 = vsel %vm434_vm0, %v712_v60, 0.0  ;;  %v702_v2 = vmul.f32 %v1844_v55, %v1844_v55  ;;  %v717_v5 = vsel %vm434_vm0, %v701_v30, 0.0  ;;  %v1456_v13 = vpop.eup %1455 }
 0x127   : > { %v709_v6 = vmul.f32 %v1807_v26, %v1807_v26  ;;  %v563_v8 = vmul.f32 0.5, %v1805_v25  ;;  %v611_v9 = vadd.f32 1.0, %v1452_v61  ;;  %v710_v12 = vmul.f32 %v1824_v40, %v1824_v40  ;;  %v1458_v21 = vpop.eup %1457 }
 0x128   : > { %670 = vadd.xlane.f32.xlu1 %v669_v41  ;;  %v720_v11 = vsel %vm434_vm0, %v702_v2, 0.0  ;;  %v1866_v16 = vmul.f32 %v610_v4, %v562_v3  ;;  %v570_v17 = vmul.f32 0.5, %v550_v35  ;;  %v618_v19 = vadd.f32 1.0, %v1454_v7  ;;  %v1460_v27 = vpop.eup %1459 }
 0x129   : > { %661 = vadd.xlane.f32.xlu0 %v660_v37  ;;  %v741_v20 = vsel %vm434_vm0, %v709_v6, 0.0  ;;  %v1869_v22 = vmul.f32 %v611_v9, %v563_v8  ;;  %v571_v23 = vmul.f32 0.5, %v1818_v36  ;;  %v619_v24 = vadd.f32 1.0, %v1456_v13 }
 0x12a   : > { %v744_v25 = vsel %vm434_vm0, %v710_v12, 0.0  ;;  %v560_v29 = vmul.f32 0.5, %v510_v42  ;;  %v608_v31 = vadd.f32 1.0, %v1458_v21  ;;  %v1873_v32 = vmul.f32 %v618_v19, %v570_v17 }
 0x12b   : > { %v654_v33 = vsel %vm434_vm0, %v1866_v16, 0.0  ;;  %v561_v35 = vmul.f32 0.5, %v1830_v43  ;;  %v609_v37 = vadd.f32 1.0, %v1460_v27  ;;  %v1878_v38 = vmul.f32 %v619_v24, %v571_v23 }
 0x12c   : > { %664 = vadd.xlane.f32.xlu1 %v663_v49  ;;  %v657_v36 = vsel %vm434_vm0, %v1869_v22, 0.0  ;;  %v1882_v41 = vmul.f32 %v608_v31, %v560_v29  ;;  %v568_v42 = vmul.f32 0.5, %v542_v54  ;;  %v678_v45 = vsel %vm434_vm0, %v1873_v32, 0.0 }
 0x12d   : > { %724 = vadd.xlane.f32.xlu0 %v723_v47  ;;  %v1886_v46 = vmul.f32 %v609_v37, %v561_v35  ;;  %v569_v47 = vmul.f32 0.5, %v545_v56  ;;  %v681_v48 = vsel %vm434_vm0, %v1878_v38, 0.0  ;;  %v707_v54 = vmul.f32 %v1866_v16, %v1866_v16 }
 0x12e   : > { %v1462_v34 = vpop.eup %1461  ;;  %v648_v50 = vsel %vm434_vm0, %v1882_v41, 0.0  ;;  %v705_v60 = vmul.f32 %v1882_v41, %v1882_v41  ;;  %v715_v2 = vmul.f32 %v1873_v32, %v1873_v32  ;;  %v716_v4 = vmul.f32 %v1878_v38, %v1878_v38 }
 0x12f   : > { %v1464_v39 = vpop.eup %1463  ;;  %v616_v44 = vadd.f32 1.0, %v1462_v34  ;;  %v651_v52 = vsel %vm434_vm0, %v1886_v46, 0.0  ;;  %v706_v63 = vmul.f32 %v1886_v46, %v1886_v46 }
 0x130   : > { %727 = vadd.xlane.f32.xlu1 %v726_v59  ;;  %v617_v43 = vadd.f32 1.0, %v1464_v39  ;;  %v735_v59 = vsel %vm434_vm0, %v707_v54, 0.0  ;;  %v729_v57 = vsel %vm434_vm0, %v705_v60, 0.0  ;;  %v762_v6 = vsel %vm434_vm0, %v716_v4, 0.0 }
 0x131   : > { %748 = vadd.xlane.f32.xlu0 %v747_v58  ;;  %v1890_v49 = vmul.f32 %v616_v44, %v568_v42  ;;  %v708_v58 = vmul.f32 %v1869_v22, %v1869_v22  ;;  %v732_v30 = vsel %vm434_vm0, %v706_v63, 0.0 }
 0x132   : > { %v1894_v51 = vmul.f32 %v617_v43, %v569_v47 }
 0x133   : > { %v672_v53 = vsel %vm434_vm0, %v1890_v49, 0.0  ;;  %v738_v62 = vsel %vm434_vm0, %v708_v58, 0.0 }
 0x134   : > { %751 = vadd.xlane.f32.xlu1 %v750_v1  ;;  %v675_v56 = vsel %vm434_vm0, %v1894_v51, 0.0  ;;  %v714_v61 = vmul.f32 %v1894_v51, %v1894_v51 }
 0x135   : > { %640 = vadd.xlane.f32.xlu0 %v639_v0  ;;  %v713_v0 = vmul.f32 %v1890_v49, %v1890_v49 }
 0x136   : > { %v756_v3 = vsel %vm434_vm0, %v714_v61, 0.0 }
 0x137   : > { %v753_v1 = vsel %vm434_vm0, %v713_v0, 0.0 }
 0x138   : > { %721 = vadd.xlane.f32.xlu1 %v720_v11 }
 0x139   : > { %718 = vadd.xlane.f32.xlu0 %v717_v5  ;;  %v759_v5 = vsel %vm434_vm0, %v715_v2, 0.0 }
 0x13c   : > { %745 = vadd.xlane.f32.xlu1 %v744_v25 }
 0x13d   : > { %742 = vadd.xlane.f32.xlu0 %v741_v20 }
 0x140   : > { %658 = vadd.xlane.f32.xlu1 %v657_v36 }
 0x141   : > { %655 = vadd.xlane.f32.xlu0 %v654_v33 }
 0x144   : > { %682 = vadd.xlane.f32.xlu1 %v681_v48 }
 0x145   : > { %679 = vadd.xlane.f32.xlu0 %v678_v45 }
 0x148   : > { %652 = vadd.xlane.f32.xlu1 %v651_v52 }
 0x149   : > { %649 = vadd.xlane.f32.xlu0 %v648_v50 }
 0x14c   : > { %676 = vadd.xlane.f32.xlu1 %v675_v56 }
 0x14d   : > { %673 = vadd.xlane.f32.xlu0 %v672_v53 }
 0x150   : > { %739 = vadd.xlane.f32.xlu1 %v738_v62 }
 0x151   : > { %736 = vadd.xlane.f32.xlu0 %v735_v59 }
 0x154   : > { %733 = vadd.xlane.f32.xlu1 %v732_v30 }
 0x155   : > { %730 = vadd.xlane.f32.xlu0 %v729_v57 }
 0x158   : > { %757 = vadd.xlane.f32.xlu1 %v756_v3 }
 0x159   : > { %754 = vadd.xlane.f32.xlu0 %v753_v1 }
 0x15c   : > { %763 = vadd.xlane.f32.xlu1 %v762_v6 }
 0x15d   : > { %760 = vadd.xlane.f32.xlu0 %v759_v5 }
 0x1ad   : > { %v644_v8 = vpop.xlane.xlu1 %643 }
 0x1ae   : > { %v668_v7 = vpop.xlane.xlu0 %667  ;;  %v687_v13 = vmul.f32 0.03125, %v644_v8 }
 0x1af   : > { %v1926_v20 = vmul.f32 0.03125, %v668_v7  ;;  %v1956_v7 = vld [vmem:[%s2225_s3] ss:$0 sm:$0xff] }
 0x1b0   : > { %v783_v21 = vmul.f32 %v687_v13, %v687_v13  ;;  %v815_v2 = vsub.f32 %v1793_v14, %v687_v13 }
 0x1b1   : > { %v647_v11 = vpop.xlane.xlu1 %646  ;;  %v791_v31 = vmul.f32 %v1926_v20, %v1926_v20 }
 0x1b2   : > { %v638_v9 = vpop.xlane.xlu0 %637  ;;  %v1928_v25 = vmul.f32 0.03125, %v647_v11 }
 0x1b3   : > { %v1936_v47 = vmul.f32 0.03125, %v638_v9 }
 0x1b4   : > { %v784_v37 = vmul.f32 %v1928_v25, %v1928_v25 }
 0x1b5   : > { %v671_v17 = vpop.xlane.xlu1 %670  ;;  %v781_v59 = vmul.f32 %v1936_v47, %v1936_v47 }
 0x1b6   : > { %v662_v12 = vpop.xlane.xlu0 %661  ;;  %v1934_v36 = vmul.f32 0.03125, %v671_v17 }
 0x1b7   : > { %v1944_v60 = vmul.f32 0.03125, %v662_v12 }
 0x1b8   : > { %v792_v50 = vmul.f32 %v1934_v36, %v1934_v36 }
 0x1b9   : > { %v665_v23 = vpop.xlane.xlu1 %664  ;;  %v789_v6 = vmul.f32 %v1944_v60, %v1944_v60 }
 0x1ba   : > { %v725_v19 = vpop.xlane.xlu0 %724  ;;  %v1946_v57 = vmul.f32 0.03125, %v665_v23  ;;  %v823_v23 = vsub.f32 %v1791_v10, %v1926_v20 }
 0x1bb   : > { %v767_v24 = vmul.f32 0.03125, %v725_v19  ;;  %v1963_v19 = vld [vmem:[%s2226_s4] ss:$0 sm:$0xff] }
 0x1bc   : > { %v790_v12 = vmul.f32 %v1946_v57, %v1946_v57 }
 0x1bd   : > { %v799_v27 = vsub.f32 %v767_v24, %v783_v21  ;;  %v728_v34 = vpop.xlane.xlu1 %727 }
 0x1be   : > { %v749_v29 = vpop.xlane.xlu0 %748  ;;  %v768_v39 = vmul.f32 0.03125, %v728_v34 }
 0x1bf   : > { %v831_v33 = vadd.f32 1e-12, %v799_v27  ;;  %v775_v35 = vmul.f32 0.03125, %v749_v29 }
 0x1c0   : > { %v800_v44 = vsub.f32 %v768_v39, %v784_v37 }
 0x1c1   : > { %1465 = vrsqrt.f32 %v831_v33  ;;  %v807_v42 = vsub.f32 %v775_v35, %v791_v31  ;;  %v752_v48 = vpop.xlane.xlu1 %751  ;;  %v816_v33 = vsub.f32 %v1799_v18, %v1928_v25 }
 0x1c2   : > { %v641_v45 = vpop.xlane.xlu0 %640  ;;  %v832_v52 = vadd.f32 1e-12, %v800_v44  ;;  %v776_v53 = vmul.f32 0.03125, %v752_v48 }
 0x1c3   : > { %v839_v43 = vadd.f32 1e-12, %v807_v42  ;;  %v1940_v54 = vmul.f32 0.03125, %v641_v45 }
 0x1c4   : > { %v808_v56 = vsub.f32 %v776_v53, %v792_v50 }
 0x1c5   : > { %1467 = vrsqrt.f32 %v839_v43  ;;  %v722_v62 = vpop.xlane.xlu1 %721  ;;  %v782_v30 = vmul.f32 %v1940_v54, %v1940_v54  ;;  %v824_v43 = vsub.f32 %v1811_v28, %v1934_v36  ;;  %v814_v36 = vsub.f32 %v1844_v55, %v1940_v54 }
 0x1c6   : > { %1469 = vrsqrt.f32 %v832_v52  ;;  %v719_v58 = vpop.xlane.xlu0 %718  ;;  %v840_v0 = vadd.f32 1e-12, %v808_v56  ;;  %v766_v61 = vmul.f32 0.03125, %v722_v62  ;;  %v813_v56 = vsub.f32 %v1795_v15, %v1936_v47 }
 0x1c7   : > { %v765_v63 = vmul.f32 0.03125, %v719_v58  ;;  %v821_v15 = vsub.f32 %v1807_v26, %v1944_v60 }
 0x1c8   : > { %1471 = vrsqrt.f32 %v840_v0  ;;  %v798_v3 = vsub.f32 %v766_v61, %v782_v30 }
 0x1c9   : > { %v797_v1 = vsub.f32 %v765_v63, %v781_v59  ;;  %v746_v9 = vpop.xlane.xlu1 %745 }
 0x1ca   : > { %v743_v4 = vpop.xlane.xlu0 %742  ;;  %v830_v14 = vadd.f32 1e-12, %v798_v3  ;;  %v774_v13 = vmul.f32 0.03125, %v746_v9  ;;  %v822_v3 = vsub.f32 %v1824_v40, %v1946_v57 }
 0x1cb   : > { %v1466_v5 = vpop.eup %1465  ;;  %v829_v8 = vadd.f32 1e-12, %v797_v1  ;;  %v773_v11 = vmul.f32 0.03125, %v743_v4 }
 0x1cc   : > { %v863_v17 = vmul.f32 %v1466_v5, %v815_v2  ;;  %v806_v27 = vsub.f32 %v774_v13, %v790_v12 }
 0x1cd   : > { %1473 = vrsqrt.f32 %v829_v8  ;;  %v805_v21 = vsub.f32 %v773_v11, %v789_v6  ;;  %v659_v35 = vpop.xlane.xlu1 %658 }
 0x1ce   : > { %v886_v24 = vmul.f32 %v1956_v7, %v863_v17  ;;  %1475 = vrsqrt.f32 %v830_v14  ;;  %v656_v29 = vpop.xlane.xlu0 %655  ;;  %v838_v44 = vadd.f32 1e-12, %v806_v27  ;;  %v2000_v9 = vmul.f32 0.03125, %v659_v35 }
 0x1cf   : > { %v1468_v31 = vpop.eup %1467  ;;  %v837_v34 = vadd.f32 1e-12, %v805_v21  ;;  %v1997_v54 = vmul.f32 0.03125, %v656_v29 }
 0x1d0   : > { %v1470_v37 = vpop.eup %1469  ;;  %v909_v39 = vadd.f32 %v1963_v19, %v886_v24  ;;  %v871_v42 = vmul.f32 %v1468_v31, %v823_v23  ;;  %v788_v23 = vmul.f32 %v2000_v9, %v2000_v9 }
 0x1d1   : > { %v864_v45 = vmul.f32 %v1470_v37, %v816_v33  ;;  %1477 = vrsqrt.f32 %v837_v34  ;;  %v1978_v25 = vpop.xlane.xlu1 %682  ;;  %v787_v12 = vmul.f32 %v1997_v54, %v1997_v54 }
 0x1d2   : > { %925 = vst.msk [vmem:[#allocation2 + $0x10] sm:$0xff] %vm434_vm0, %v909_v39  ;;  %v894_v10 = vmul.f32 %v1956_v7, %v871_v42  ;;  %1479 = vrsqrt.f32 %v838_v44  ;;  %v1973_v20 = vpop.xlane.xlu0 %679  ;;  %v1472_v48 = vpop.eup %1471 }
 0x1d3   : > { %v887_v18 = vmul.f32 %v1956_v7, %v864_v45  ;;  %v872_v53 = vmul.f32 %v1472_v48, %v824_v43 }
 0x1d4   : > { %v917_v50 = vadd.f32 %v1963_v19, %v894_v10 }
 0x1d5   : > { %v910_v52 = vadd.f32 %v1963_v19, %v887_v18  ;;  %v895_v28 = vmul.f32 %v1956_v7, %v872_v53  ;;  %v653_v62 = vpop.xlane.xlu1 %652  ;;  %v2028_v53 = vmul.f32 0.03125, %v1973_v20 }
 0x1d6   : > { %933 = vst.msk [vmem:[#allocation2 + $0x50] sm:$0xff] %vm434_vm0, %v917_v50  ;;  %v650_v58 = vpop.xlane.xlu0 %649  ;;  %v2014_v24 = vmul.f32 0.03125, %v653_v62 }
 0x1d7   : > { %v1474_v59 = vpop.eup %1473  ;;  %926 = vst.msk [vmem:[#allocation2 + $0x18] sm:$0xff] %vm434_vm0, %v910_v52  ;;  %v918_v30 = vadd.f32 %v1963_v19, %v895_v28  ;;  %v2009_v17 = vmul.f32 0.03125, %v650_v58 }
 0x1d8   : > { %v1476_v63 = vpop.eup %1475  ;;  %v861_v0 = vmul.f32 %v1474_v59, %v813_v56  ;;  %v786_v45 = vmul.f32 %v2014_v24, %v2014_v24 }
 0x1d9   : > { %v862_v61 = vmul.f32 %v1476_v63, %v814_v36  ;;  %934 = vst.msk [vmem:[#allocation2 + $0x58] sm:$0xff] %vm434_vm0, %v918_v30  ;;  %v677_v4 = vpop.xlane.xlu1 %676  ;;  %v785_v35 = vmul.f32 %v2009_v17, %v2009_v17  ;;  %v2033_v36 = vmul.f32 0.03125, %v1978_v25 }
 0x1da   : > { %v884_v47 = vmul.f32 %v1956_v7, %v861_v0  ;;  %v674_v1 = vpop.xlane.xlu0 %673  ;;  %v2025_v10 = vmul.f32 0.03125, %v677_v4 }
 0x1db   : > { %v1478_v2 = vpop.eup %1477  ;;  %v885_v55 = vmul.f32 %v1956_v7, %v862_v61  ;;  %v2021_v37 = vmul.f32 0.03125, %v674_v1  ;;  %v796_v25 = vmul.f32 %v2033_v36, %v2033_v36 }
 0x1dc   : > { %v1480_v5 = vpop.eup %1479  ;;  %v907_v6 = vadd.f32 %v1963_v19, %v884_v47  ;;  %v869_v8 = vmul.f32 %v1478_v2, %v821_v15  ;;  %v794_v62 = vmul.f32 %v2025_v10, %v2025_v10  ;;  %v795_v15 = vmul.f32 %v2028_v53, %v2028_v53 }
 0x1dd   : > { %v908_v26 = vadd.f32 %v1963_v19, %v885_v55  ;;  %v870_v60 = vmul.f32 %v1480_v5, %v822_v3  ;;  %v740_v14 = vpop.xlane.xlu1 %739  ;;  %v793_v56 = vmul.f32 %v2021_v37, %v2021_v37  ;;  %v819_v5 = vsub.f32 %v1866_v16, %v1997_v54 }
 0x1de   : > { %923 = vst.msk [vmem:[#allocation2] sm:$0xff] %vm434_vm0, %v907_v6  ;;  %v892_v40 = vmul.f32 %v1956_v7, %v869_v8  ;;  %v737_v57 = vpop.xlane.xlu0 %736  ;;  %v772_v27 = vmul.f32 0.03125, %v740_v14  ;;  %v817_v14 = vsub.f32 %v1882_v41, %v2009_v17  ;;  %v818_v16 = vsub.f32 %v1886_v46, %v2014_v24 }
 0x1df   : > { %924 = vst.msk [vmem:[#allocation2 + $0x8] sm:$0xff] %vm434_vm0, %v908_v26  ;;  %v893_v11 = vmul.f32 %v1956_v7, %v870_v60  ;;  %v771_v13 = vmul.f32 0.03125, %v737_v57  ;;  %v820_v26 = vsub.f32 %v1869_v22, %v2000_v9  ;;  %v826_v46 = vsub.f32 %v1894_v51, %v2025_v10 }
 0x1e0   : > { %v915_v21 = vadd.f32 %v1963_v19, %v892_v40  ;;  %v804_v33 = vsub.f32 %v772_v27, %v788_v23  ;;  %v828_v51 = vsub.f32 %v1878_v38, %v2033_v36 }
 0x1e1   : > { %v916_v29 = vadd.f32 %v1963_v19, %v893_v11  ;;  %v803_v31 = vsub.f32 %v771_v13, %v787_v12  ;;  %v734_v42 = vpop.xlane.xlu1 %733 }
 0x1e2   : > { %931 = vst.msk [vmem:[#allocation2 + $0x40] sm:$0xff] %vm434_vm0, %v915_v21  ;;  %v731_v34 = vpop.xlane.xlu0 %730  ;;  %v836_v43 = vadd.f32 1e-12, %v804_v33  ;;  %v770_v18 = vmul.f32 0.03125, %v734_v42 }
 0x1e3   : > { %932 = vst.msk [vmem:[#allocation2 + $0x48] sm:$0xff] %vm434_vm0, %v916_v29  ;;  %v835_v39 = vadd.f32 1e-12, %v803_v31  ;;  %v769_v44 = vmul.f32 0.03125, %v731_v34  ;;  %v825_v31 = vsub.f32 %v1890_v49, %v2021_v37  ;;  %v827_v49 = vsub.f32 %v1873_v32, %v2028_v53 }
 0x1e4   : > { %v802_v50 = vsub.f32 %v770_v18, %v786_v45 }
 0x1e5   : > { %1481 = vrsqrt.f32 %v835_v39  ;;  %v801_v48 = vsub.f32 %v769_v44, %v785_v35  ;;  %v758_v59 = vpop.xlane.xlu1 %757 }
 0x1e6   : > { %1483 = vrsqrt.f32 %v836_v43  ;;  %v755_v52 = vpop.xlane.xlu0 %754  ;;  %v834_v63 = vadd.f32 1e-12, %v802_v50  ;;  %v778_v0 = vmul.f32 0.03125, %v758_v59 }
 0x1e7   : > { %v833_v58 = vadd.f32 1e-12, %v801_v48  ;;  %v777_v28 = vmul.f32 0.03125, %v755_v52 }
 0x1e8   : > { %v810_v61 = vsub.f32 %v778_v0, %v794_v62 }
 0x1e9   : > { %1485 = vrsqrt.f32 %v833_v58  ;;  %v809_v30 = vsub.f32 %v777_v28, %v793_v56  ;;  %v764_v1 = vpop.xlane.xlu1 %763 }
 0x1ea   : > { %1487 = vrsqrt.f32 %v834_v63  ;;  %v761_v20 = vpop.xlane.xlu0 %760  ;;  %v842_v3 = vadd.f32 1e-12, %v810_v61  ;;  %v780_v55 = vmul.f32 0.03125, %v764_v1 }
 0x1eb   : > { %v841_v47 = vadd.f32 1e-12, %v809_v30  ;;  %v779_v2 = vmul.f32 0.03125, %v761_v20 }
 0x1ec   : > { %v812_v6 = vsub.f32 %v780_v55, %v796_v25 }
 0x1ed   : > { %1489 = vrsqrt.f32 %v841_v47  ;;  %v811_v4 = vsub.f32 %v779_v2, %v795_v15 }
 0x1ee   : > { %1491 = vrsqrt.f32 %v842_v3  ;;  %v844_v11 = vadd.f32 1e-12, %v812_v6 }
 0x1ef   : > { %v1482_v8 = vpop.eup %1481  ;;  %v843_v60 = vadd.f32 1e-12, %v811_v4 }
 0x1f0   : > { %v1484_v40 = vpop.eup %1483  ;;  %v867_v57 = vmul.f32 %v1482_v8, %v819_v5 }
 0x1f1   : > { %v868_v12 = vmul.f32 %v1484_v40, %v820_v26  ;;  %1493 = vrsqrt.f32 %v843_v60 }
 0x1f2   : > { %v890_v13 = vmul.f32 %v1956_v7, %v867_v57  ;;  %1495 = vrsqrt.f32 %v844_v11 }
 0x1f3   : > { %v1486_v21 = vpop.eup %1485  ;;  %v891_v54 = vmul.f32 %v1956_v7, %v868_v12 }
 0x1f4   : > { %v1488_v23 = vpop.eup %1487  ;;  %v913_v22 = vadd.f32 %v1963_v19, %v890_v13  ;;  %v865_v9 = vmul.f32 %v1486_v21, %v817_v14 }
 0x1f5   : > { %v914_v27 = vadd.f32 %v1963_v19, %v891_v54  ;;  %v866_v29 = vmul.f32 %v1488_v23, %v818_v16 }
 0x1f6   : > { %929 = vst.msk [vmem:[#allocation2 + $0x30] sm:$0xff] %vm434_vm0, %v913_v22  ;;  %v888_v41 = vmul.f32 %v1956_v7, %v865_v9 }
 0x1f7   : > { %v1490_v17 = vpop.eup %1489  ;;  %930 = vst.msk [vmem:[#allocation2 + $0x38] sm:$0xff] %vm434_vm0, %v914_v27  ;;  %v889_v24 = vmul.f32 %v1956_v7, %v866_v29 }
 0x1f8   : > { %v1492_v33 = vpop.eup %1491  ;;  %v911_v34 = vadd.f32 %v1963_v19, %v888_v41  ;;  %v873_v35 = vmul.f32 %v1490_v17, %v825_v31 }
 0x1f9   : > { %v912_v39 = vadd.f32 %v1963_v19, %v889_v24  ;;  %v874_v42 = vmul.f32 %v1492_v33, %v826_v46 }
 0x1fa   : > { %927 = vst.msk [vmem:[#allocation2 + $0x20] sm:$0xff] %vm434_vm0, %v911_v34  ;;  %v896_v37 = vmul.f32 %v1956_v7, %v873_v35 }
 0x1fb   : > { %v1494_v44 = vpop.eup %1493  ;;  %928 = vst.msk [vmem:[#allocation2 + $0x28] sm:$0xff] %vm434_vm0, %v912_v39  ;;  %v897_v45 = vmul.f32 %v1956_v7, %v874_v42 }
 0x1fc   : > { %v1496_v10 = vpop.eup %1495  ;;  %v919_v43 = vadd.f32 %v1963_v19, %v896_v37  ;;  %v875_v18 = vmul.f32 %v1494_v44, %v827_v49 }
 0x1fd   : > { %v920_v48 = vadd.f32 %v1963_v19, %v897_v45  ;;  %v876_v50 = vmul.f32 %v1496_v10, %v828_v51 }
 0x1fe   : > { %935 = vst.msk [vmem:[#allocation2 + $0x60] sm:$0xff] %vm434_vm0, %v919_v43  ;;  %v898_v32 = vmul.f32 %v1956_v7, %v875_v18 }
 0x1ff   : > { %936 = vst.msk [vmem:[#allocation2 + $0x68] sm:$0xff] %vm434_vm0, %v920_v48  ;;  %v899_v52 = vmul.f32 %v1956_v7, %v876_v50 }
 0x200   : > { %v921_v38 = vadd.f32 %v1963_v19, %v898_v32 }
 0x201   : > { %v922_v53 = vadd.f32 %v1963_v19, %v899_v52 }
 0x202   : > { %937 = vst.msk [vmem:[#allocation2 + $0x70] sm:$0xff] %vm434_vm0, %v921_v38 }
 0x203   : > { %938 = vst.msk [vmem:[#allocation2 + $0x78] sm:$0xff] %vm434_vm0, %v922_v53 }
 0x204 PF: > { %v1497_v56 = vld [vmem:[%s1704_s16 + $0x4] ss:$8 sps:$4 sm:$0xff]   ;;  %v1499_v58 = vld [vmem:[%s1704_s16] ss:$8 sps:$4 sm:$0xff]   ;;  %v1583_v59 = vmov 0   ;;  %vm999_vm1 = vcmask 261120   ;;  %v969_v12 = vlaneseq  ;;  %s2234_s21 = scalar_lea.vmem %s2228_s6, %s2243_s23 }
 0x205   : > { %1056 = vmatprep.mubr.bf16.mxu0 %v1583_v59  ;;  %1096 = vmatprep.mubr.bf16.mxu1 %v1583_v59  ;;  %v1500_v7 = vld [vmem:[%s1704_s16 + $0x14] ss:$8 sps:$4 sm:$0xff]   ;;  %v1502_v28 = vld [vmem:[%s1704_s16 + $0x10] ss:$8 sps:$4 sm:$0xff]   ;;  %v939_v36 = vld [vmem:[#allocation2] sm:$0xff]  ;;  %s1333_s23 = sshll.u32 %s1573_s27, 8 }
 0x206   : > { %1024 = vmatprep.subr.bf16.mxu0 %v1497_v56  ;;  %1368 = vmatprep.subr.bf16.mxu1 %v1497_v56  ;;  %v940_v19 = vld [vmem:[#allocation2 + $0x8] sm:$0xff]  ;;  %v947_v62 = vld [vmem:[#allocation2 + $0x40] sm:$0xff]  ;;  %v941_v61 = vld [vmem:[#allocation2 + $0x10] sm:$0xff]  ;;  %v970_v14 = vshrl.u32 %v969_v12, 7  ;;  %s1186_s5 = sshll.u32 %s1706_s17, 4  ;;  %s2159_s15 = scalar_lea.hbm %s2229_s7, %s1333_s23  ;;  %s2165_s5 = int_to_ptr.vmem [resolvable:$true] %s1186_s5 }
 0x207   : > { %1025 = vmatpush1.bf16.msra.mxu0 %v1499_v58  ;;  %1370 = vmatpush1.bf16.msra.mxu1 %v1499_v58  ;;  %v948_v63 = vld [vmem:[#allocation2 + $0x48] sm:$0xff]  ;;  %v955_v0 = vpack.c.bf16 %v940_v19, %v939_v36  ;;  %v942_v20 = vld [vmem:[#allocation2 + $0x18] sm:$0xff]  ;;  %v949_v15 = vld [vmem:[#allocation2 + $0x50] sm:$0xff]  ;;  %s1170_s30 = scalar_lea.sflag [#allocation5], %s1693_s22  ;;  %s1503_s8 = scalar_lea.vmem %s2165_s5, 4096 }
 0x208   : > { %1026 = vmatprep.subr.bf16.mxu0 %v1500_v7  ;;  %1369 = vmatprep.subr.bf16.mxu1 %v1500_v7  ;;  %v959_v30 = vpack.c.bf16 %v948_v63, %v947_v62  ;;  %v950_v47 = vld [vmem:[#allocation2 + $0x58] sm:$0xff]  ;;  %v956_v1 = vpack.c.bf16 %v942_v20, %v941_v61  ;;  %v943_v25 = vld [vmem:[#allocation2 + $0x20] sm:$0xff]  ;;  %v944_v3 = vld [vmem:[#allocation2 + $0x28] sm:$0xff]  ;;  %v971_v13 = vsub.s32 0, %v970_v14  ;;  %v975_v16 = vsub.s32 1, %v970_v14  ;;  %p1504_p2 = scmp.ne.s32.totalorder %s2165_s5, %s1503_s8  ;;  %s1584_s12 = smov [#allocation4]  }
 0x209   : > { %v960_v2 = vpack.c.bf16 %v950_v47, %v949_v15  ;;  %v951_v55 = vld [vmem:[#allocation2 + $0x60] sm:$0xff]  ;;  %v952_v4 = vld [vmem:[#allocation2 + $0x68] sm:$0xff]  ;;  %v957_v5 = vpack.c.bf16 %v944_v3, %v943_v25  ;;  %v945_v8 = vld [vmem:[#allocation2 + $0x30] sm:$0xff]  ;;  %s1507_s18 = sshll.u32 %s1584_s12, 4  ;;  %s1508_s18 = int_to_ptr.vmem [resolvable:$false] %s1507_s18 }
 0x20a   : > { %v961_v6 = vpack.c.bf16 %v952_v4, %v951_v55  ;;  %v946_v26 = vld [vmem:[#allocation2 + $0x38] sm:$0xff]  ;;  %v953_v60 = vld [vmem:[#allocation2 + $0x70] sm:$0xff]  ;;  %v967_v21 = vld [vmem:[%s2234_s21] sm:$0x3]  ;;  %p1505_p3 = pnand %p1504_p2, %p1667_p5  ;;  %s1509_s19 = scalar_lea.vmem %s1508_s18, 8192 }
 0x20b   : > { %1027 = vmatpush1.bf16.msra.mxu0 %v1502_v28  ;;  %1371 = vmatpush1.bf16.msra.mxu1 %v1502_v28  ;;  %v954_v40 = vld [vmem:[#allocation2 + $0x78] sm:$0xff]  ;;  %v958_v57 = vpack.c.bf16 %v946_v26, %v945_v8  ;;  %v2098_v54 = vrot.slane %v967_v21, %v971_v13  ;;  %v2100_v23 = vrot.slane %v967_v21, %v975_v16  ;;  %p1510_p6 = scmp.lt.s32.totalorder %s2165_s5, %s1508_s18  ;;  %p1511_p7 = scmp.lt.s32.totalorder %s1509_s19, %s1503_s8 }
 0x20c   : > { %v962_v11 = vpack.c.bf16 %v954_v40, %v953_v60  ;;  %p1506_p4 = pneg %p1505_p3 }
 0x20d   : > { %p1512_p8 = por %p1511_p7, %p1510_p6 }
 0x20e   : > { %1319 = vmatmul.mubr.msk.bf16.vlgmr.msra.gmra.mrb[0].mxu0 %vm999_vm1, %v955_v0  ;;  %1323 = vmatmul.mubr.msk.bf16.vlgmr.msra.gmra.mrb[0].mxu1 %vm999_vm1, %v959_v30 }
 0x20f   : > { %1066 = vmatprep.mubr.bf16.mxu0 %v1583_v59  ;;  %1106 = vmatprep.mubr.bf16.mxu1 %v1583_v59  ;;  %p1513_p11 = pnand %p1512_p8, %p1506_p4 }
 0x216   : > { %1320 = vmatmul.mubr.msk.bf16.gmra.mrb[4].mxu0 %vm999_vm1, %v956_v1  ;;  %1324 = vmatmul.mubr.msk.bf16.gmra.mrb[4].mxu1 %vm999_vm1, %v960_v2 }
 0x217   : > { %1076 = vmatprep.mubr.bf16.mxu0 %v1583_v59  ;;  %1116 = vmatprep.mubr.bf16.mxu1 %v1583_v59 }
 0x21e   : > { %1321 = vmatmul.mubr.msk.bf16.gmra.mrb[8].mxu0 %vm999_vm1, %v957_v5  ;;  %1325 = vmatmul.mubr.msk.bf16.gmra.mrb[8].mxu1 %vm999_vm1, %v961_v6 }
 0x21f   : > { %1086 = vmatprep.mubr.bf16.mxu0 %v1583_v59  ;;  %1126 = vmatprep.mubr.bf16.mxu1 %v1583_v59 }
 0x226   : > { %1322 = vmatmul.mubr.msk.bf16.gmra.mrb[12].mxu0 %vm999_vm1, %v958_v57  ;;  %1326 = vmatmul.mubr.msk.bf16.gmra.mrb[12].mxu1 %vm999_vm1, %v962_v11 }
 0x2e1   : > { %v1058_v22 = vpop.f32.mrb[0].mxu0  ;;  %v1098_v9 = vpop.f32.mrb[0].mxu1 }
 0x2e2   : > { %v1059_v27 = vadd.f32 %v1058_v22, %v2098_v54  ;;  %v1099_v29 = vadd.f32 %v1098_v9, %v2098_v54  ;;  %v1060_v31 = vpop.f32.mrb[1].mxu0  ;;  %v1100_v41 = vpop.f32.mrb[1].mxu1 }
 0x2e3   : > { %v1061_v17 = vadd.f32 %v1060_v31, %v2100_v23  ;;  %v1101_v46 = vadd.f32 %v1100_v41, %v2100_v23  ;;  %v1062_v24 = vpop.f32.mrb[2].mxu0  ;;  %v1102_v33 = vpop.f32.mrb[2].mxu1 }
 0x2e4   : > { %1137 = vst [vmem:[%s1706_s17] sm:$0xff] %v1059_v27  ;;  %1153 = vst [vmem:[%s1706_s17 + $0x80] sm:$0xff] %v1099_v29  ;;  %v1063_v34 = vadd.f32 %v1062_v24, %v2098_v54  ;;  %v1103_v35 = vadd.f32 %v1102_v33, %v2098_v54  ;;  %v1064_v39 = vpop.f32.mrb[3].mxu0  ;;  %v1104_v42 = vpop.f32.mrb[3].mxu1 }
 0x2e5   : > { %1138 = vst [vmem:[%s1706_s17 + $0x8] sm:$0xff] %v1061_v17  ;;  %1154 = vst [vmem:[%s1706_s17 + $0x88] sm:$0xff] %v1101_v46  ;;  %v1065_v49 = vadd.f32 %v1064_v39, %v2100_v23  ;;  %v1105_v37 = vadd.f32 %v1104_v42, %v2100_v23 }
 0x2e6   : > { %1139 = vst [vmem:[%s1706_s17 + $0x10] sm:$0xff] %v1063_v34  ;;  %1155 = vst [vmem:[%s1706_s17 + $0x90] sm:$0xff] %v1103_v35 }
 0x2e7   : > { %1140 = vst [vmem:[%s1706_s17 + $0x18] sm:$0xff] %v1065_v49  ;;  %1156 = vst [vmem:[%s1706_s17 + $0x98] sm:$0xff] %v1105_v37 }
 0x2e9   : > { %v1068_v44 = vpop.f32.mrb[4].mxu0  ;;  %v1108_v51 = vpop.f32.mrb[4].mxu1 }
 0x2ea   : > { %v1069_v45 = vadd.f32 %v1068_v44, %v2098_v54  ;;  %v1109_v10 = vadd.f32 %v1108_v51, %v2098_v54  ;;  %v1070_v43 = vpop.f32.mrb[5].mxu0  ;;  %v1110_v18 = vpop.f32.mrb[5].mxu1 }
 0x2eb   : > { %v1071_v48 = vadd.f32 %v1070_v43, %v2100_v23  ;;  %v1111_v50 = vadd.f32 %v1110_v18, %v2100_v23  ;;  %v1072_v32 = vpop.f32.mrb[6].mxu0  ;;  %v1112_v52 = vpop.f32.mrb[6].mxu1 }
 0x2ec   : > { %1141 = vst [vmem:[%s1706_s17 + $0x20] sm:$0xff] %v1069_v45  ;;  %1157 = vst [vmem:[%s1706_s17 + $0xa0] sm:$0xff] %v1109_v10  ;;  %v1073_v38 = vadd.f32 %v1072_v32, %v2098_v54  ;;  %v1113_v53 = vadd.f32 %v1112_v52, %v2098_v54  ;;  %v1074_v56 = vpop.f32.mrb[7].mxu0  ;;  %v1114_v58 = vpop.f32.mrb[7].mxu1 }
 0x2ed   : > { %1142 = vst [vmem:[%s1706_s17 + $0x28] sm:$0xff] %v1071_v48  ;;  %1158 = vst [vmem:[%s1706_s17 + $0xa8] sm:$0xff] %v1111_v50  ;;  %v1075_v59 = vadd.f32 %v1074_v56, %v2100_v23  ;;  %v1115_v7 = vadd.f32 %v1114_v58, %v2100_v23 }
 0x2ee   : > { %1143 = vst [vmem:[%s1706_s17 + $0x30] sm:$0xff] %v1073_v38  ;;  %1159 = vst [vmem:[%s1706_s17 + $0xb0] sm:$0xff] %v1113_v53 }
 0x2ef   : > { %1144 = vst [vmem:[%s1706_s17 + $0x38] sm:$0xff] %v1075_v59  ;;  %1160 = vst [vmem:[%s1706_s17 + $0xb8] sm:$0xff] %v1115_v7 }
 0x2f1   : > { %v1078_v28 = vpop.f32.mrb[8].mxu0  ;;  %v1118_v36 = vpop.f32.mrb[8].mxu1 }
 0x2f2   : > { %v1079_v19 = vadd.f32 %v1078_v28, %v2098_v54  ;;  %v1119_v62 = vadd.f32 %v1118_v36, %v2098_v54  ;;  %v1080_v63 = vpop.f32.mrb[9].mxu0  ;;  %v1120_v0 = vpop.f32.mrb[9].mxu1 }
 0x2f3   : > { %v1081_v30 = vadd.f32 %v1080_v63, %v2100_v23  ;;  %v1121_v61 = vadd.f32 %v1120_v0, %v2100_v23  ;;  %v1082_v20 = vpop.f32.mrb[10].mxu0  ;;  %v1122_v15 = vpop.f32.mrb[10].mxu1 }
 0x2f4   : > { %1145 = vst [vmem:[%s1706_s17 + $0x40] sm:$0xff] %v1079_v19  ;;  %1161 = vst [vmem:[%s1706_s17 + $0xc0] sm:$0xff] %v1119_v62  ;;  %v1083_v47 = vadd.f32 %v1082_v20, %v2098_v54  ;;  %v1123_v1 = vadd.f32 %v1122_v15, %v2098_v54  ;;  %v1084_v2 = vpop.f32.mrb[11].mxu0  ;;  %v1124_v25 = vpop.f32.mrb[11].mxu1 }
 0x2f5   : > { %1146 = vst [vmem:[%s1706_s17 + $0x48] sm:$0xff] %v1081_v30  ;;  %1162 = vst [vmem:[%s1706_s17 + $0xc8] sm:$0xff] %v1121_v61  ;;  %v1085_v3 = vadd.f32 %v1084_v2, %v2100_v23  ;;  %v1125_v55 = vadd.f32 %v1124_v25, %v2100_v23 }
 0x2f6   : > { %1147 = vst [vmem:[%s1706_s17 + $0x50] sm:$0xff] %v1083_v47  ;;  %1163 = vst [vmem:[%s1706_s17 + $0xd0] sm:$0xff] %v1123_v1 }
 0x2f7   : > { %1148 = vst [vmem:[%s1706_s17 + $0x58] sm:$0xff] %v1085_v3  ;;  %1164 = vst [vmem:[%s1706_s17 + $0xd8] sm:$0xff] %v1125_v55 }
 0x2f9   : > { %v1088_v4 = vpop.f32.mrb[12].mxu0  ;;  %v1128_v5 = vpop.f32.mrb[12].mxu1 }
 0x2fa   : > { %v1089_v6 = vadd.f32 %v1088_v4, %v2098_v54  ;;  %v1129_v8 = vadd.f32 %v1128_v5, %v2098_v54  ;;  %v1090_v26 = vpop.f32.mrb[13].mxu0  ;;  %v1130_v60 = vpop.f32.mrb[13].mxu1 }
 0x2fb   : > { %v1091_v40 = vadd.f32 %v1090_v26, %v2100_v23  ;;  %v1131_v57 = vadd.f32 %v1130_v60, %v2100_v23  ;;  %v1092_v11 = vpop.f32.mrb[14].mxu0  ;;  %v1132_v12 = vpop.f32.mrb[14].mxu1 }
 0x2fc   : > { %1149 = vst [vmem:[%s1706_s17 + $0x60] sm:$0xff] %v1089_v6  ;;  %1165 = vst [vmem:[%s1706_s17 + $0xe0] sm:$0xff] %v1129_v8  ;;  %v1093_v14 = vadd.f32 %v1092_v11, %v2098_v54  ;;  %v1133_v13 = vadd.f32 %v1132_v12, %v2098_v54  ;;  %v1094_v21 = vpop.f32.mrb[15].mxu0  ;;  %v1134_v16 = vpop.f32.mrb[15].mxu1 }
 0x2fd   : > { %1150 = vst [vmem:[%s1706_s17 + $0x68] sm:$0xff] %v1091_v40  ;;  %1166 = vst [vmem:[%s1706_s17 + $0xe8] sm:$0xff] %v1131_v57  ;;  %v1095_v22 = vadd.f32 %v1094_v21, %v2100_v23  ;;  %v1135_v9 = vadd.f32 %v1134_v16, %v2100_v23 }
 0x2fe   : > { %1151 = vst [vmem:[%s1706_s17 + $0x70] sm:$0xff] %v1093_v14  ;;  %1167 = vst [vmem:[%s1706_s17 + $0xf0] sm:$0xff] %v1133_v13 }
 0x2ff   : > { %1152 = vst [vmem:[%s1706_s17 + $0x78] sm:$0xff] %v1095_v22  ;;  %1168 = vst [vmem:[%s1706_s17 + $0xf8] sm:$0xff] %v1135_v9 }
 0x300   : > { %1516 = shalt.err (!%p1513_p11)
}
 0x301   : > { %s1517_s17 = scalar_lea.hbm %s2159_s15, 4096  ;;  %s1521_s21 = scalar_lea.hbm %s2229_s7, 8192 }
 0x302   : > { %p1518_p12 = scmp.ne.s32.totalorder %s2159_s15, %s1517_s17  ;;  %p1522_p1 = scmp.lt.u32.totalorder %s2159_s15, %s2229_s7 }
 0x303   : > { %p1523_p2 = scmp.lt.u32.totalorder %s1521_s21, %s1517_s17  ;;  %p1525_p4 = scmp.lt.u32.totalorder %s1517_s17, %s2159_s15 }
 0x304   : > { %p1519_p13 = pnand %p1518_p12, %p1667_p5 }
 0x305   : > { %p1524_p3 = por %p1523_p2, %p1522_p1 }
 0x306   : > { %p1520_p0 = pneg %p1519_p13 }
 0x307   : > { %p1526_p6 = por %p1525_p4, %p1524_p3 }
 0x309   : > { %p1527_p7 = pnand %p1526_p6, %p1520_p0 }
 0x30b   : > { %1530 = shalt.err (!%p1527_p7)
}
 0x30c   : > { %s1585_s10 = smov 256   ;;  %s1586_s8 = smov 512  }
 0x30d   : > { %s1587_s12 = smov 16  }
 0x30e   : > { %1372 = dma.vmem_to_hbm [thread:$0]  (%p1667_p5), %s2165_s5, 4096, %s2159_s15, %s1170_s30, %s1585_s10, %s1586_s8, %s1587_s12  }
 0x30f PF: > { %s1201_s18 = sand.u32 1, %s1561_s24   ;;  %p1375_p8 = pnand %p1293_p10, %p1678_p9 }
 0x310   : > { %s1202_s19 = scalar_lea.sflag [#allocation5], %s1201_s18 }
 0x311   : > { %1556 = dma.done.wait (!%p1375_p8), %s1202_s19, 4096  }
 0x312   : > { %1558 = vsyncadd (!%p1375_p8), %s1202_s19, 4294963200  ;;  %s20_s29 = sadd.s32 1, %s1581_s29   ;;  %s2235_s24 = smov %s1565_s25 }
 0x313   : > { %p17_p11 = scmp.ge.s32.totalorder %s20_s29, 4   ;;  %s2236_s25 = smov %s1569_s26 }
 0x314   : > { %s2237_s26 = smov %s1676_s13  ;;  %s2238_s27 = smov %s1577_s28 }
 0x315   : > { %s2239_s28 = smov %s2241_s9  ;;  %19 = sbr.rel (!%p17_p11) target bundleno = 6 (0x6), region = 136 }
 0x31c   :  { %1207 = vsyncpa [#allocation5], 1 }
 0x31d   :  { %1209 = vsyncpa [#allocation5 + $0x1], 1 }

</bundles_post_ra>
